<compile_context>
chip_gen: v7x
topology: tpu7x:2x2x1
jax: 0.10.0
libtpu: 0.0.40
codegen_flags: <defaults>
</compile_context>

<pallas_src>
import functools

import jax
import jax.numpy as jnp
from jax.experimental import pallas as pl
from jax.experimental.pallas import tpu as pltpu


def _round_up(x, m):
    return ((x + m - 1) // m) * m


def _onehot(ids_col, size, dtype):
    """(Bt, 1) int32 ids -> (Bt, size) one-hot (built with a select, no i1 casts)."""
    iota = jax.lax.broadcasted_iota(jnp.int32, (1, size), 1)
    return jnp.where(ids_col == iota, 1.0, 0.0).astype(dtype)


def _pvdm_loss_kernel(tgt_ids_ref, ct_ids_ref, ctx_ids_ref, neg_ids_ref,
                      tgt_w_ref, ctx_w_ref, out_a_t_ref, out_b_t_ref,
                      out_ref, *, batch_total, block_b, num_targets_p, vocab_p):
    """One batch tile of the PVDM negative-sampling loss (partial sum).

    All gathers are done in-kernel via one-hot matmuls against VMEM-resident
    tables; only int32 indices are streamed per tile.
    """
    i = pl.program_id(0)
    f32 = jnp.float32
    cd = tgt_w_ref.dtype                         # table transport/compute dtype

    # ---- in-kernel gathers (MXU one-hot matmuls, f32 accumulation) ----------
    oh_tgt = _onehot(tgt_ids_ref[...], num_targets_p, cd)        # (Bt, Tp)
    emb_target = jnp.dot(oh_tgt, tgt_w_ref[...],
                         preferred_element_type=f32)             # (Bt, Dp)

    ctx_ids = ctx_ids_ref[...]                                   # (Bt, C) int32
    counts_ctx = _onehot(ctx_ids[:, 0:1], vocab_p, f32)
    for c in range(1, ctx_ids.shape[1]):                         # C is small/static
        counts_ctx = counts_ctx + _onehot(ctx_ids[:, c:c + 1], vocab_p, f32)
    # torch.sum over the context axis ("mean_contexts" in the original module
    # is a misnomer; it is a sum) == multiplicity-weighted table matmul.
    sum_ctx = jnp.dot(counts_ctx.astype(cd), ctx_w_ref[...],
                      preferred_element_type=f32)                # (Bt, Dp)

    # ---- score of stack=[emb_target, sum_ctx] against every output row ------
    # S[b, v] = <output_w[v, :D], emb_target[b]> + <output_w[v, D:], sum_ctx[b]>
    S = (jnp.dot(emb_target.astype(cd), out_a_t_ref[...],
                 preferred_element_type=f32)
         + jnp.dot(sum_ctx.astype(cd), out_b_t_ref[...],
                   preferred_element_type=f32))                  # (Bt, Vp) f32
    S = jnp.clip(S, -10.0, 10.0)

    # -logsigmoid(x) = log1p(exp(-x)); -logsigmoid(-x) = log1p(exp(x)).
    # Safe because S is pre-clamped to [-10, 10].  EUP work, kept in f32.
    pos_contrib = jnp.log1p(jnp.exp(-S))                         # (Bt, Vp)
    neg_contrib = jnp.log1p(jnp.exp(S))                          # (Bt, Vp)

    # ---- select the scores the loss actually uses ---------------------------
    oh_ct = _onehot(ct_ids_ref[...], vocab_p, f32)               # (Bt, Vp)
    neg_ids = neg_ids_ref[...]                                   # (Bt, N) int32
    counts_neg = _onehot(neg_ids[:, 0:1], vocab_p, f32)
    for n in range(1, neg_ids.shape[1]):                         # N is small/static
        counts_neg = counts_neg + _onehot(neg_ids[:, n:n + 1], vocab_p, f32)

    per_row = jnp.sum(oh_ct * pos_contrib + counts_neg * neg_contrib,
                      axis=-1, keepdims=True)                    # (Bt, 1) f32

    # Mask rows of the (possibly ragged / index-padded) last tile BEFORE the
    # tile reduction so the mean is over the true batch size.
    row = jax.lax.broadcasted_iota(jnp.int32, (block_b, 1), 0)
    valid = (i * block_b + row) < batch_total
    per_row = jnp.where(valid, per_row, 0.0)

    partial = jnp.sum(per_row).astype(f32)
    # Lane-dense per-tile partial-sum slab (unmasked full-vreg store).
    out_ref[...] = jnp.broadcast_to(partial, out_ref.shape)


def _pick_vmem_limit_bytes():
    """Per-generation VMEM limit: ~96 MiB on v5e/v6e (128 MiB), ~48 MiB on v7x."""
    phys = 64 * 1024 * 1024          # conservative fallback (v7x per-core VMEM)
    try:
        info = pltpu.get_tpu_info()
        phys = int(getattr(info, "vmem_capacity_bytes", phys) or phys)
    except Exception:
        pass
    return max(16 * 1024 * 1024, min(int(0.75 * phys), 100 * 1024 * 1024))


class PVDMParams:
    """Deterministic, in-script parameter init matching the PyTorch module."""

    def __init__(self, num_targets, vocab_size, embedding_dimension, key):
        k1, k2 = jax.random.split(key)
        initrange = 1.0 / embedding_dimension
        concat_dim = 2 * embedding_dimension
        # init.uniform_(target_embeddings.weight, -initrange, initrange)
        self.target_w = jax.random.uniform(
            k1, (num_targets, embedding_dimension),
            minval=-initrange, maxval=initrange, dtype=jnp.float32)
        # init.constant_(context_embeddings.weight, 0)
        self.context_w = jnp.zeros((vocab_size, embedding_dimension), jnp.float32)
        # nn.Embedding default init: N(0, 1)
        self.output_w = jax.random.normal(
            k2, (vocab_size, concat_dim), dtype=jnp.float32)
        # NOTE: linear1 / linear2 / ReLU / LogSoftmax exist in __init__ but are
        # never used in forward(), so they are intentionally omitted here.
        self.emb_dim = embedding_dimension


def pvdm_forward(params, pos_graph_emb, pos_context_target, pos_contexts,
                 pos_negatives, *, block_b=None, compute_dtype=None,
                 vmem_limit_bytes=None):
    """PVDM negative-sampling loss; all embedding gathers happen in-kernel."""
    D = params.emb_dim
    T = params.target_w.shape[0]
    V = params.context_w.shape[0]
    B = pos_graph_emb.shape[0]
    C = pos_contexts.shape[1]
    N = pos_negatives.shape[1]

    if compute_dtype is None:
        compute_dtype = params.target_w.dtype
    cd = jnp.dtype(compute_dtype)

    # Aligned (lane-dense) table shapes; zero padding does not change the math.
    Tp = _round_up(T, 8)
    Vp = _round_up(V, 128)
    Dp = _round_up(D, 128)

    def pad2d(x, r, c):
        return jnp.pad(x, ((0, r - x.shape[0]), (0, c - x.shape[1])))

    # Tables are cast once (table-sized, cheap) and the output table is split
    # into its two D-wide halves and transposed so the kernel never slices the
    # lane axis at a non-aligned offset.
    tgt_w = pad2d(params.target_w.astype(cd), Tp, Dp)            # (Tp, Dp)
    ctx_w = pad2d(params.context_w.astype(cd), Vp, Dp)           # (Vp, Dp)
    out_a_t = pad2d(params.output_w[:, :D].T.astype(cd), Dp, Vp)  # (Dp, Vp)
    out_b_t = pad2d(params.output_w[:, D:].T.astype(cd), Dp, Vp)  # (Dp, Vp)

    if vmem_limit_bytes is None:
        vmem_limit_bytes = _pick_vmem_limit_bytes()

    # --- batch-tile auto-sizing against ~80% of the VMEM limit ---------------
    itemsize = cd.itemsize
    sub_mult = 8 * max(1, 4 // itemsize)          # 8 for f32, 16 for bf16
    table_bytes = 2 * itemsize * (Tp * Dp + Vp * Dp + 2 * Dp * Vp)   # dbl-buffered
    idx_row_bytes = 2 * 4 * (2 * 128 + _round_up(C, 128) + _round_up(N, 128))
    interm_row_bytes = 4 * (8 * Vp + 3 * Dp + _round_up(Tp, 128))    # conservative
    row_bytes = idx_row_bytes + interm_row_bytes

    if block_b is None:
        budget = int(0.8 * vmem_limit_bytes) - table_bytes
        block_b = max(sub_mult, (budget // row_bytes) // sub_mult * sub_mult)
    block_b = _round_up(int(block_b), sub_mult)
    if B > sub_mult:
        # Keep >= 2 tiles so ("parallel",) megacore sharding has work on both
        # TensorCores (v7x) instead of collapsing the grid to one tile.
        block_b = min(block_b, _round_up(pl.cdiv(B, 2), sub_mult))
    block_b = min(block_b, _round_up(B, sub_mult))

    num_tiles = pl.cdiv(B, block_b)
    b_pad = num_tiles * block_b

    # Pad ONLY the int32 index arrays (thousands of times cheaper than padding
    # gathered embeddings); padded rows are masked in-kernel.
    def pad_idx(x):
        x = x.astype(jnp.int32)
        if x.ndim == 1:
            x = x[:, None]
        if x.shape[0] != b_pad:
            x = jnp.pad(x, ((0, b_pad - x.shape[0]), (0, 0)))
        return x

    tgt_ids = pad_idx(pos_graph_emb)          # (b_pad, 1)
    ct_ids = pad_idx(pos_context_target)      # (b_pad, 1)
    ctx_ids = pad_idx(pos_contexts)           # (b_pad, C)
    neg_ids = pad_idx(pos_negatives)          # (b_pad, N)

    kernel = functools.partial(_pvdm_loss_kernel, batch_total=B,
                               block_b=block_b, num_targets_p=Tp, vocab_p=Vp)

    partials = pl.pallas_call(
        kernel,
        out_shape=jax.ShapeDtypeStruct((num_tiles, 8, 128), jnp.float32),
        grid_spec=pltpu.PrefetchScalarGridSpec(
            num_scalar_prefetch=0,
            grid=(num_tiles,),
            in_specs=[
                pl.BlockSpec((block_b, 1), lambda i: (i, 0)),
                pl.BlockSpec((block_b, 1), lambda i: (i, 0)),
                pl.BlockSpec((block_b, C), lambda i: (i, 0)),
                pl.BlockSpec((block_b, N), lambda i: (i, 0)),
                # Tables: full-array blocks with constant index_maps -> DMA'd
                # once and kept resident in VMEM across all batch tiles.
                pl.BlockSpec((Tp, Dp), lambda i: (0, 0)),
                pl.BlockSpec((Vp, Dp), lambda i: (0, 0)),
                pl.BlockSpec((Dp, Vp), lambda i: (0, 0)),
                pl.BlockSpec((Dp, Vp), lambda i: (0, 0)),
            ],
            out_specs=pl.BlockSpec((1, 8, 128), lambda i: (i, 0, 0)),
        ),
        compiler_params=pltpu.CompilerParams(
            dimension_semantics=("parallel",),
            vmem_limit_bytes=int(vmem_limit_bytes),
        ),
    )(tgt_ids, ct_ids, ctx_ids, neg_ids, tgt_w, ctx_w, out_a_t, out_b_t)

    # Per-tile partial sums -> mean over the true batch size.
    return jnp.sum(partials[:, 0, 0]) / B


def pvdm_forward_ref(params, pos_graph_emb, pos_context_target, pos_contexts,
                     pos_negatives):
    """Pure-JAX reference (mirrors the PyTorch code line by line)."""
    emb_target = params.target_w[pos_graph_emb]
    mean_contexts = jnp.sum(params.context_w[pos_contexts], axis=1)
    emb_ct = params.output_w[pos_context_target]
    emb_neg = params.output_w[pos_negatives]
    stack = jnp.concatenate((emb_target, mean_contexts), axis=1)
    objective = jnp.sum(stack * emb_ct, axis=1)
    objective = jnp.clip(objective, -10.0, 10.0)
    objective = -jax.nn.log_sigmoid(objective)
    neg_obj = jnp.einsum("bnd,bd->bn", emb_neg, stack)
    neg_obj = jnp.clip(neg_obj, -10.0, 10.0)
    neg_obj = -jnp.sum(jax.nn.log_sigmoid(-neg_obj), axis=1)
    return jnp.mean(objective + neg_obj)


if __name__ == "__main__":
    key = jax.random.PRNGKey(0)
    kp, k_g, k_ct, k_c, k_n, k_cw = jax.random.split(key, 6)

    num_targets = 12
    vocab_size = 32
    emb_dim = 32
    batch = 20            # deliberately NOT a multiple of the batch tile
    n_contexts = 5
    n_negatives = 6

    params = PVDMParams(num_targets, vocab_size, emb_dim, kp)

    pos_graph_emb = jax.random.randint(k_g, (batch,), 0, num_targets)
    pos_context_target = jax.random.randint(k_ct, (batch,), 0, vocab_size)
    pos_contexts = jax.random.randint(k_c, (batch, n_contexts), 0, vocab_size)
    pos_negatives = jax.random.randint(k_n, (batch, n_negatives), 0, vocab_size)

    # --- f32-table path, small explicit tile: multi-tile pipelining + masking.
    # Tolerance accounts for the in-kernel gathers / score dots running on the
    # MXU (f32 matmuls are implemented with bf16 passes by the TPU compiler).
    ref = pvdm_forward_ref(params, pos_graph_emb, pos_context_target,
                           pos_contexts, pos_negatives)
    loss = pvdm_forward(params, pos_graph_emb, pos_context_target,
                        pos_contexts, pos_negatives, block_b=8)
    loss = jax.block_until_ready(loss)
    assert jnp.allclose(loss, ref, rtol=2e-2, atol=1e-2), (loss, ref)

    # --- bf16 transport/compute path (f32 accumulation + f32 logsigmoid math).
    loss_bf16 = pvdm_forward(params, pos_graph_emb, pos_context_target,
                             pos_contexts, pos_negatives, block_b=8,
                             compute_dtype=jnp.bfloat16)
    loss_bf16 = jax.block_until_ready(loss_bf16)
    assert jnp.allclose(loss_bf16, ref, rtol=5e-2, atol=5e-2), (loss_bf16, ref)

    # --- auto-sized tile + non-zero context embeddings (module inits them to
    #     zero, which would hide bugs in the context-sum path).
    params.context_w = 0.1 * jax.random.normal(
        k_cw, (vocab_size, emb_dim), dtype=jnp.float32)
    ref2 = pvdm_forward_ref(params, pos_graph_emb, pos_context_target,
                            pos_contexts, pos_negatives)
    loss2 = pvdm_forward(params, pos_graph_emb, pos_context_target,
                         pos_contexts, pos_negatives)
    loss2 = jax.block_until_ready(loss2)
    assert jnp.allclose(loss2, ref2, rtol=2e-2, atol=2e-2), (loss2, ref2)

    print("KERNEL_OK")
</pallas_src>

<mosaic_0001>
module attributes {stable_mosaic.version = 11 : i64} {
  func.func @_pvdm_loss_kernel(%arg0: i32, %arg1: memref<8x1xi32, #tpu.memory_space<vmem>>, %arg2: memref<8x1xi32, #tpu.memory_space<vmem>>, %arg3: memref<8x5xi32, #tpu.memory_space<vmem>>, %arg4: memref<8x6xi32, #tpu.memory_space<vmem>>, %arg5: memref<16x128xf32, #tpu.memory_space<vmem>>, %arg6: memref<128x128xf32, #tpu.memory_space<vmem>>, %arg7: memref<128x128xf32, #tpu.memory_space<vmem>>, %arg8: memref<128x128xf32, #tpu.memory_space<vmem>>, %arg9: memref<1x8x128xf32, #tpu.memory_space<vmem>>) attributes {dimension_semantics = [#tpu.dimension_semantics<parallel>], iteration_bounds = array<i64: 3>, scalar_prefetch = 0 : i64, scratch_operands = 0 : i64, tpu.core_type = #tpu.core_type<tc>, window_params = [{transform_indices = @transform_0, window_bounds = array<i64: 8, 1>}, {transform_indices = @transform_1, window_bounds = array<i64: 8, 1>}, {transform_indices = @transform_2, window_bounds = array<i64: 8, 5>}, {transform_indices = @transform_3, window_bounds = array<i64: 8, 6>}, {pipeline_mode = #tpu.pipeline_mode<synchronous>, transform_indices = @transform_4, window_bounds = array<i64: 16, 128>}, {pipeline_mode = #tpu.pipeline_mode<synchronous>, transform_indices = @transform_5, window_bounds = array<i64: 128, 128>}, {pipeline_mode = #tpu.pipeline_mode<synchronous>, transform_indices = @transform_6, window_bounds = array<i64: 128, 128>}, {pipeline_mode = #tpu.pipeline_mode<synchronous>, transform_indices = @transform_7, window_bounds = array<i64: 128, 128>}, {transform_indices = @transform_8, window_bounds = array<i64: 1, 8, 128>}]} {
    %c0 = arith.constant 0 : index
    %c0_0 = arith.constant 0 : index
    %0 = vector.load %arg1[%c0, %c0_0] : memref<8x1xi32, #tpu.memory_space<vmem>>, vector<8x1xi32>
    %1 = tpu.iota {dimensions = array<i32: 1>} : vector<1x16xi32>
    %2 = vector.broadcast %0 : vector<8x1xi32> to vector<8x16xi32>
    %3 = vector.broadcast %1 : vector<1x16xi32> to vector<8x16xi32>
    %4 = arith.cmpi eq, %2, %3 : vector<8x16xi32>
    %cst = arith.constant 1.000000e+00 : f32
    %cst_1 = arith.constant 0.000000e+00 : f32
    %5 = vector.broadcast %cst : f32 to vector<8x16xf32>
    %6 = vector.broadcast %cst_1 : f32 to vector<8x16xf32>
    %7 = arith.select %4, %5, %6 : vector<8x16xi1>, vector<8x16xf32>
    %c0_2 = arith.constant 0 : index
    %c0_3 = arith.constant 0 : index
    %8 = vector.load %arg5[%c0_2, %c0_3] : memref<16x128xf32, #tpu.memory_space<vmem>>, vector<16x128xf32>
    %cst_4 = arith.constant dense<0.000000e+00> : vector<8x128xf32>
    %9 = tpu.matmul %7, %8, %cst_4 {dimension_numbers = #tpu.dot_dimension_numbers<[1], [0], [0], [1], [0, 0, 1, 1], [], []>} : vector<8x16xf32>, vector<16x128xf32>, vector<8x128xf32> -> vector<8x128xf32>
    %c0_5 = arith.constant 0 : index
    %c0_6 = arith.constant 0 : index
    %10 = vector.load %arg3[%c0_5, %c0_6] : memref<8x5xi32, #tpu.memory_space<vmem>>, vector<8x5xi32>
    %11 = vector.extract_strided_slice %10 {offsets = [0, 0], sizes = [8, 1], strides = [1, 1]} : vector<8x5xi32> to vector<8x1xi32>
    %12 = tpu.iota {dimensions = array<i32: 1>} : vector<1x128xi32>
    %13 = vector.broadcast %11 : vector<8x1xi32> to vector<8x128xi32>
    %14 = vector.broadcast %12 : vector<1x128xi32> to vector<8x128xi32>
    %15 = arith.cmpi eq, %13, %14 : vector<8x128xi32>
    %cst_7 = arith.constant 1.000000e+00 : f32
    %cst_8 = arith.constant 0.000000e+00 : f32
    %16 = vector.broadcast %cst_7 : f32 to vector<8x128xf32>
    %17 = vector.broadcast %cst_8 : f32 to vector<8x128xf32>
    %18 = arith.select %15, %16, %17 : vector<8x128xi1>, vector<8x128xf32>
    %19 = vector.extract_strided_slice %10 {offsets = [0, 1], sizes = [8, 1], strides = [1, 1]} : vector<8x5xi32> to vector<8x1xi32>
    %20 = tpu.iota {dimensions = array<i32: 1>} : vector<1x128xi32>
    %21 = vector.broadcast %19 : vector<8x1xi32> to vector<8x128xi32>
    %22 = vector.broadcast %20 : vector<1x128xi32> to vector<8x128xi32>
    %23 = arith.cmpi eq, %21, %22 : vector<8x128xi32>
    %cst_9 = arith.constant 1.000000e+00 : f32
    %cst_10 = arith.constant 0.000000e+00 : f32
    %24 = vector.broadcast %cst_9 : f32 to vector<8x128xf32>
    %25 = vector.broadcast %cst_10 : f32 to vector<8x128xf32>
    %26 = arith.select %23, %24, %25 : vector<8x128xi1>, vector<8x128xf32>
    %27 = arith.addf %18, %26 : vector<8x128xf32>
    %28 = vector.extract_strided_slice %10 {offsets = [0, 2], sizes = [8, 1], strides = [1, 1]} : vector<8x5xi32> to vector<8x1xi32>
    %29 = tpu.iota {dimensions = array<i32: 1>} : vector<1x128xi32>
    %30 = vector.broadcast %28 : vector<8x1xi32> to vector<8x128xi32>
    %31 = vector.broadcast %29 : vector<1x128xi32> to vector<8x128xi32>
    %32 = arith.cmpi eq, %30, %31 : vector<8x128xi32>
    %cst_11 = arith.constant 1.000000e+00 : f32
    %cst_12 = arith.constant 0.000000e+00 : f32
    %33 = vector.broadcast %cst_11 : f32 to vector<8x128xf32>
    %34 = vector.broadcast %cst_12 : f32 to vector<8x128xf32>
    %35 = arith.select %32, %33, %34 : vector<8x128xi1>, vector<8x128xf32>
    %36 = arith.addf %27, %35 : vector<8x128xf32>
    %37 = vector.extract_strided_slice %10 {offsets = [0, 3], sizes = [8, 1], strides = [1, 1]} : vector<8x5xi32> to vector<8x1xi32>
    %38 = tpu.iota {dimensions = array<i32: 1>} : vector<1x128xi32>
    %39 = vector.broadcast %37 : vector<8x1xi32> to vector<8x128xi32>
    %40 = vector.broadcast %38 : vector<1x128xi32> to vector<8x128xi32>
    %41 = arith.cmpi eq, %39, %40 : vector<8x128xi32>
    %cst_13 = arith.constant 1.000000e+00 : f32
    %cst_14 = arith.constant 0.000000e+00 : f32
    %42 = vector.broadcast %cst_13 : f32 to vector<8x128xf32>
    %43 = vector.broadcast %cst_14 : f32 to vector<8x128xf32>
    %44 = arith.select %41, %42, %43 : vector<8x128xi1>, vector<8x128xf32>
    %45 = arith.addf %36, %44 : vector<8x128xf32>
    %46 = vector.extract_strided_slice %10 {offsets = [0, 4], sizes = [8, 1], strides = [1, 1]} : vector<8x5xi32> to vector<8x1xi32>
    %47 = tpu.iota {dimensions = array<i32: 1>} : vector<1x128xi32>
    %48 = vector.broadcast %46 : vector<8x1xi32> to vector<8x128xi32>
    %49 = vector.broadcast %47 : vector<1x128xi32> to vector<8x128xi32>
    %50 = arith.cmpi eq, %48, %49 : vector<8x128xi32>
    %cst_15 = arith.constant 1.000000e+00 : f32
    %cst_16 = arith.constant 0.000000e+00 : f32
    %51 = vector.broadcast %cst_15 : f32 to vector<8x128xf32>
    %52 = vector.broadcast %cst_16 : f32 to vector<8x128xf32>
    %53 = arith.select %50, %51, %52 : vector<8x128xi1>, vector<8x128xf32>
    %54 = arith.addf %45, %53 : vector<8x128xf32>
    %c0_17 = arith.constant 0 : index
    %c0_18 = arith.constant 0 : index
    %55 = vector.load %arg6[%c0_17, %c0_18] : memref<128x128xf32, #tpu.memory_space<vmem>>, vector<128x128xf32>
    %cst_19 = arith.constant dense<0.000000e+00> : vector<8x128xf32>
    %56 = tpu.matmul %54, %55, %cst_19 {dimension_numbers = #tpu.dot_dimension_numbers<[1], [0], [0], [1], [0, 0, 1, 1], [], []>} : vector<8x128xf32>, vector<128x128xf32>, vector<8x128xf32> -> vector<8x128xf32>
    %c0_20 = arith.constant 0 : index
    %c0_21 = arith.constant 0 : index
    %57 = vector.load %arg7[%c0_20, %c0_21] : memref<128x128xf32, #tpu.memory_space<vmem>>, vector<128x128xf32>
    %cst_22 = arith.constant dense<0.000000e+00> : vector<8x128xf32>
    %58 = tpu.matmul %9, %57, %cst_22 {dimension_numbers = #tpu.dot_dimension_numbers<[1], [0], [0], [1], [0, 0, 1, 1], [], []>} : vector<8x128xf32>, vector<128x128xf32>, vector<8x128xf32> -> vector<8x128xf32>
    %c0_23 = arith.constant 0 : index
    %c0_24 = arith.constant 0 : index
    %59 = vector.load %arg8[%c0_23, %c0_24] : memref<128x128xf32, #tpu.memory_space<vmem>>, vector<128x128xf32>
    %cst_25 = arith.constant dense<0.000000e+00> : vector<8x128xf32>
    %60 = tpu.matmul %56, %59, %cst_25 {dimension_numbers = #tpu.dot_dimension_numbers<[1], [0], [0], [1], [0, 0, 1, 1], [], []>} : vector<8x128xf32>, vector<128x128xf32>, vector<8x128xf32> -> vector<8x128xf32>
    %61 = arith.addf %58, %60 : vector<8x128xf32>
    %cst_26 = arith.constant -1.000000e+01 : f32
    %cst_27 = arith.constant 1.000000e+01 : f32
    %62 = vector.broadcast %cst_26 : f32 to vector<8x128xf32>
    %63 = arith.maximumf %62, %61 : vector<8x128xf32>
    %64 = vector.broadcast %cst_27 : f32 to vector<8x128xf32>
    %65 = arith.minimumf %64, %63 : vector<8x128xf32>
    %cst_28 = arith.constant 0.000000e+00 : f32
    %66 = vector.broadcast %cst_28 : f32 to vector<8x128xf32>
    %67 = arith.subf %66, %65 : vector<8x128xf32>
    %68 = math.exp %67 : vector<8x128xf32>
    %69 = math.log1p %68 : vector<8x128xf32>
    %70 = math.exp %65 : vector<8x128xf32>
    %71 = math.log1p %70 : vector<8x128xf32>
    %c0_29 = arith.constant 0 : index
    %c0_30 = arith.constant 0 : index
    %72 = vector.load %arg2[%c0_29, %c0_30] : memref<8x1xi32, #tpu.memory_space<vmem>>, vector<8x1xi32>
    %73 = tpu.iota {dimensions = array<i32: 1>} : vector<1x128xi32>
    %74 = vector.broadcast %72 : vector<8x1xi32> to vector<8x128xi32>
    %75 = vector.broadcast %73 : vector<1x128xi32> to vector<8x128xi32>
    %76 = arith.cmpi eq, %74, %75 : vector<8x128xi32>
    %cst_31 = arith.constant 1.000000e+00 : f32
    %cst_32 = arith.constant 0.000000e+00 : f32
    %77 = vector.broadcast %cst_31 : f32 to vector<8x128xf32>
    %78 = vector.broadcast %cst_32 : f32 to vector<8x128xf32>
    %79 = arith.select %76, %77, %78 : vector<8x128xi1>, vector<8x128xf32>
    %c0_33 = arith.constant 0 : index
    %c0_34 = arith.constant 0 : index
    %80 = vector.load %arg4[%c0_33, %c0_34] : memref<8x6xi32, #tpu.memory_space<vmem>>, vector<8x6xi32>
    %81 = vector.extract_strided_slice %80 {offsets = [0, 0], sizes = [8, 1], strides = [1, 1]} : vector<8x6xi32> to vector<8x1xi32>
    %82 = tpu.iota {dimensions = array<i32: 1>} : vector<1x128xi32>
    %83 = vector.broadcast %81 : vector<8x1xi32> to vector<8x128xi32>
    %84 = vector.broadcast %82 : vector<1x128xi32> to vector<8x128xi32>
    %85 = arith.cmpi eq, %83, %84 : vector<8x128xi32>
    %cst_35 = arith.constant 1.000000e+00 : f32
    %cst_36 = arith.constant 0.000000e+00 : f32
    %86 = vector.broadcast %cst_35 : f32 to vector<8x128xf32>
    %87 = vector.broadcast %cst_36 : f32 to vector<8x128xf32>
    %88 = arith.select %85, %86, %87 : vector<8x128xi1>, vector<8x128xf32>
    %89 = vector.extract_strided_slice %80 {offsets = [0, 1], sizes = [8, 1], strides = [1, 1]} : vector<8x6xi32> to vector<8x1xi32>
    %90 = tpu.iota {dimensions = array<i32: 1>} : vector<1x128xi32>
    %91 = vector.broadcast %89 : vector<8x1xi32> to vector<8x128xi32>
    %92 = vector.broadcast %90 : vector<1x128xi32> to vector<8x128xi32>
    %93 = arith.cmpi eq, %91, %92 : vector<8x128xi32>
    %cst_37 = arith.constant 1.000000e+00 : f32
    %cst_38 = arith.constant 0.000000e+00 : f32
    %94 = vector.broadcast %cst_37 : f32 to vector<8x128xf32>
    %95 = vector.broadcast %cst_38 : f32 to vector<8x128xf32>
    %96 = arith.select %93, %94, %95 : vector<8x128xi1>, vector<8x128xf32>
    %97 = arith.addf %88, %96 : vector<8x128xf32>
    %98 = vector.extract_strided_slice %80 {offsets = [0, 2], sizes = [8, 1], strides = [1, 1]} : vector<8x6xi32> to vector<8x1xi32>
    %99 = tpu.iota {dimensions = array<i32: 1>} : vector<1x128xi32>
    %100 = vector.broadcast %98 : vector<8x1xi32> to vector<8x128xi32>
    %101 = vector.broadcast %99 : vector<1x128xi32> to vector<8x128xi32>
    %102 = arith.cmpi eq, %100, %101 : vector<8x128xi32>
    %cst_39 = arith.constant 1.000000e+00 : f32
    %cst_40 = arith.constant 0.000000e+00 : f32
    %103 = vector.broadcast %cst_39 : f32 to vector<8x128xf32>
    %104 = vector.broadcast %cst_40 : f32 to vector<8x128xf32>
    %105 = arith.select %102, %103, %104 : vector<8x128xi1>, vector<8x128xf32>
    %106 = arith.addf %97, %105 : vector<8x128xf32>
    %107 = vector.extract_strided_slice %80 {offsets = [0, 3], sizes = [8, 1], strides = [1, 1]} : vector<8x6xi32> to vector<8x1xi32>
    %108 = tpu.iota {dimensions = array<i32: 1>} : vector<1x128xi32>
    %109 = vector.broadcast %107 : vector<8x1xi32> to vector<8x128xi32>
    %110 = vector.broadcast %108 : vector<1x128xi32> to vector<8x128xi32>
    %111 = arith.cmpi eq, %109, %110 : vector<8x128xi32>
    %cst_41 = arith.constant 1.000000e+00 : f32
    %cst_42 = arith.constant 0.000000e+00 : f32
    %112 = vector.broadcast %cst_41 : f32 to vector<8x128xf32>
    %113 = vector.broadcast %cst_42 : f32 to vector<8x128xf32>
    %114 = arith.select %111, %112, %113 : vector<8x128xi1>, vector<8x128xf32>
    %115 = arith.addf %106, %114 : vector<8x128xf32>
    %116 = vector.extract_strided_slice %80 {offsets = [0, 4], sizes = [8, 1], strides = [1, 1]} : vector<8x6xi32> to vector<8x1xi32>
    %117 = tpu.iota {dimensions = array<i32: 1>} : vector<1x128xi32>
    %118 = vector.broadcast %116 : vector<8x1xi32> to vector<8x128xi32>
    %119 = vector.broadcast %117 : vector<1x128xi32> to vector<8x128xi32>
    %120 = arith.cmpi eq, %118, %119 : vector<8x128xi32>
    %cst_43 = arith.constant 1.000000e+00 : f32
    %cst_44 = arith.constant 0.000000e+00 : f32
    %121 = vector.broadcast %cst_43 : f32 to vector<8x128xf32>
    %122 = vector.broadcast %cst_44 : f32 to vector<8x128xf32>
    %123 = arith.select %120, %121, %122 : vector<8x128xi1>, vector<8x128xf32>
    %124 = arith.addf %115, %123 : vector<8x128xf32>
    %125 = vector.extract_strided_slice %80 {offsets = [0, 5], sizes = [8, 1], strides = [1, 1]} : vector<8x6xi32> to vector<8x1xi32>
    %126 = tpu.iota {dimensions = array<i32: 1>} : vector<1x128xi32>
    %127 = vector.broadcast %125 : vector<8x1xi32> to vector<8x128xi32>
    %128 = vector.broadcast %126 : vector<1x128xi32> to vector<8x128xi32>
    %129 = arith.cmpi eq, %127, %128 : vector<8x128xi32>
    %cst_45 = arith.constant 1.000000e+00 : f32
    %cst_46 = arith.constant 0.000000e+00 : f32
    %130 = vector.broadcast %cst_45 : f32 to vector<8x128xf32>
    %131 = vector.broadcast %cst_46 : f32 to vector<8x128xf32>
    %132 = arith.select %129, %130, %131 : vector<8x128xi1>, vector<8x128xf32>
    %133 = arith.addf %124, %132 : vector<8x128xf32>
    %134 = arith.mulf %79, %69 : vector<8x128xf32>
    %135 = arith.mulf %133, %71 : vector<8x128xf32>
    %136 = arith.addf %134, %135 : vector<8x128xf32>
    %cst_47 = arith.constant dense<0.000000e+00> : vector<8xf32>
    %137 = vector.multi_reduction <add>, %136, %cst_47 [1] : vector<8x128xf32> to vector<8xf32>
    %138 = vector.shape_cast %137 : vector<8xf32> to vector<8x1xf32>
    %139 = tpu.iota {dimensions = array<i32: 0>} : vector<8x1xi32>
    %c8_i32 = arith.constant 8 : i32
    %140 = arith.muli %arg0, %c8_i32 : i32
    %141 = vector.broadcast %140 : i32 to vector<8x1xi32>
    %142 = arith.addi %141, %139 : vector<8x1xi32>
    %c20_i32 = arith.constant 20 : i32
    %143 = vector.broadcast %c20_i32 : i32 to vector<8x1xi32>
    %144 = arith.cmpi slt, %142, %143 : vector<8x1xi32>
    %cst_48 = arith.constant 0.000000e+00 : f32
    %145 = vector.broadcast %cst_48 : f32 to vector<8x1xf32>
    %146 = arith.select %144, %138, %145 : vector<8x1xi1>, vector<8x1xf32>
    %147 = vector.shape_cast %146 : vector<8x1xf32> to vector<1x8x1xf32>
    %cst_49 = arith.constant dense<0.000000e+00> : vector<1xf32>
    %148 = vector.multi_reduction <add>, %147, %cst_49 [1, 2] : vector<1x8x1xf32> to vector<1xf32>
    %149 = vector.shape_cast %148 : vector<1xf32> to vector<1x1x1xf32>
    %150 = vector.extract %149[0, 0, 0] : f32 from vector<1x1x1xf32>
    %151 = vector.broadcast %150 : f32 to vector<1x8x128xf32>
    %c0_50 = arith.constant 0 : index
    %c0_51 = arith.constant 0 : index
    %c0_52 = arith.constant 0 : index
    %152 = vector.load %arg9[%c0_50, %c0_51, %c0_52] : memref<1x8x128xf32, #tpu.memory_space<vmem>>, vector<1x8x128xf32>
    tpu.vector_store %arg9[%c0_50, %c0_51, %c0_52], %151 {strides = array<i32>} : memref<1x8x128xf32, #tpu.memory_space<vmem>>, vector<1x8x128xf32>,
    return
  }
  func.func @transform_0(%arg0: i32) -> (i32, i32) {
    %c0_i32 = arith.constant 0 : i32
    %c0_i32_0 = arith.constant 0 : i32
    return %arg0, %c0_i32 : i32, i32
  }
  func.func @transform_1(%arg0: i32) -> (i32, i32) {
    %c0_i32 = arith.constant 0 : i32
    %c0_i32_0 = arith.constant 0 : i32
    return %arg0, %c0_i32 : i32, i32
  }
  func.func @transform_2(%arg0: i32) -> (i32, i32) {
    %c0_i32 = arith.constant 0 : i32
    %c0_i32_0 = arith.constant 0 : i32
    return %arg0, %c0_i32 : i32, i32
  }
  func.func @transform_3(%arg0: i32) -> (i32, i32) {
    %c0_i32 = arith.constant 0 : i32
    %c0_i32_0 = arith.constant 0 : i32
    return %arg0, %c0_i32 : i32, i32
  }
  func.func @transform_4(%arg0: i32) -> (i32, i32) {
    %c0_i32 = arith.constant 0 : i32
    %c0_i32_0 = arith.constant 0 : i32
    %c0_i32_1 = arith.constant 0 : i32
    return %c0_i32, %c0_i32_0 : i32, i32
  }
  func.func @transform_5(%arg0: i32) -> (i32, i32) {
    %c0_i32 = arith.constant 0 : i32
    %c0_i32_0 = arith.constant 0 : i32
    %c0_i32_1 = arith.constant 0 : i32
    return %c0_i32, %c0_i32_0 : i32, i32
  }
  func.func @transform_6(%arg0: i32) -> (i32, i32) {
    %c0_i32 = arith.constant 0 : i32
    %c0_i32_0 = arith.constant 0 : i32
    %c0_i32_1 = arith.constant 0 : i32
    return %c0_i32, %c0_i32_0 : i32, i32
  }
  func.func @transform_7(%arg0: i32) -> (i32, i32) {
    %c0_i32 = arith.constant 0 : i32
    %c0_i32_0 = arith.constant 0 : i32
    %c0_i32_1 = arith.constant 0 : i32
    return %c0_i32, %c0_i32_0 : i32, i32
  }
  func.func @transform_8(%arg0: i32) -> (i32, i32, i32) {
    %c0_i32 = arith.constant 0 : i32
    %c0_i32_0 = arith.constant 0 : i32
    %c0_i32_1 = arith.constant 0 : i32
    return %arg0, %c0_i32, %c0_i32_0 : i32, i32, i32
  }
}

</mosaic_0001>

<bundles_post_ra>
// kernel: tpu_custom_call.1
= control target key start
LH: loop header
LB: loop body
LE: loop exit
PB: predicated region body
PF: predicated region fallthrough
CT: control target
= control target key end

     0   :  { %13 = vsyncpa [#allocation3], 0  ;;  %s1930_s0 = inlined_call_operand.vmem [shape: s32[24,1], index: 0, kind: input, shape index: {}]   ;;  %s1931_s1 = inlined_call_operand.vmem [shape: s32[24,1], index: 1, kind: input, shape index: {}]   ;;  %s1932_s2 = inlined_call_operand.vmem [shape: s32[24,5], index: 2, kind: input, shape index: {}]   ;;  %s1933_s3 = inlined_call_operand.vmem [shape: s32[24,6], index: 3, kind: input, shape index: {}]   ;;  %s1934_s4 = inlined_call_operand.hbm [shape: f32[16,128], index: 4, kind: input, shape index: {}]   ;;  %s1935_s5 = inlined_call_operand.vmem [shape: f32[128,128], index: 5, kind: input, shape index: {}]   ;;  %s1936_s6 = inlined_call_operand.hbm [shape: f32[128,128], index: 6, kind: input, shape index: {}]   ;;  %s1937_s7 = inlined_call_operand.hbm [shape: f32[128,128], index: 7, kind: input, shape index: {}]   ;;  %s1938_s8 = inlined_call_operand.hbm [shape: f32[3,8,128], index: 8, kind: output, shape index: {}]  }
   0x1   :  { %14 = vsyncpa [#allocation6], 0 }
   0x2   :  { %15 = vsyncpa [#allocation4], 0 }
   0x3   :  { %17 = vsyncpa [#allocation4 + $0x1], 0  ;;  %s1585_s27 = smov 0   ;;  %s1587_s28 = smov 0  }
   0x4   :  { %s1589_s29 = smov 0   ;;  %s1591_s30 = smov 0  }
   0x5 LB: > { %1946 = sst [smem:[#allocation12_spill]] %s1519_s29  ;;  %s1606_s9 = sadd.s32 4294967295, %s1523_s30   ;;  %s1523_s30 = sphi %s1591_s30, %s1963_s30   ;;  %s1519_s29 = sphi %s1589_s29, %s1965_s29   ;;  %s1515_s28 = sphi %s1587_s28, %s1967_s28   ;;  %s1511_s27 = sphi %s1585_s27, %s1966_s27  }
   0x6   : > { %s1000_s10 = sadd.s32 4294967294, %s1523_s30   ;;  %s1610_s11 = sadd.s32 1, %s1523_s30  }
   0x7   : > { %1947 = sst [smem:[#allocation13_spill]] %s1610_s11  ;;  %s218_s12 = sadd.s32 1, %s1519_s29 }
   0x8   : > { %s215_s13 = ssub.s32 %s1523_s30, %s1610_s11  ;;  %p228_p0 = scmp.ne.s32.totalorder %s1519_s29, %s1515_s28 }
   0x9   : > { %p216_p1 = scmp.eq.s32.totalorder %s215_s13, 0  ;;  %p229_p2 = scmp.eq.s32.totalorder %s1606_s9, 2 }
   0xa   : > { %p234_p3 = scmp.ne.s32.totalorder %s1515_s28, %s1511_s27  ;;  %p235_p4 = scmp.eq.s32.totalorder %s1000_s10, 2 }
   0xb   : > { %s1621_s14 = scalar_select %p216_p1, %s1519_s29, %s218_s12  }
   0xc   : > { %p1623_p5 = por %p229_p2, %p228_p0  ;;  %p1627_p6 = por %p235_p4, %p234_p3 }
   0xd   : > { %1948 = sst [smem:[#allocation14_spill]] %s1621_s14  ;;  %p1001_p7 = scmp.ge.s32.totalorder %s1523_s30, 1 }
   0xe   : > { %s1949_s15 = scalar_select %p1623_p5, 1, 0 }
   0xf   : > { %s1950_s16 = scalar_select %p1627_p6, 1, 0 }
  0x10   : > { %p242_p8 = scmp.lt.s32.totalorder %s1523_s30, 4  ;;  %p1939_p9 = scmp.eq.s32.totalorder %s1606_s9, 0 }
  0x11   : > { %1951 = sst [smem:[#allocation15_spill]] %s1950_s16  ;;  %s1525_s18 = smov [#allocation5]  }
  0x12   : > { %p1634_p10 = pnand %p1001_p7, %p242_p8  ;;  %s270_s19 = sshll.u32 %s1525_s18, 4  ;;  %s1640_s19 = int_to_ptr.vmem [resolvable:$true] %s270_s19 }
  0x13   : > { %s1526_s21 = smov [#allocation2]   ;;  %s1527_s23 = smov [#allocation7]  }
  0x14   : > { %s1952_s17 = scalar_select %p1634_p10, 1, 0 }
  0x15   : > { %p1281_p11 = pneg %p1634_p10  ;;  %s254_s22 = sshll.u32 %s1526_s21, 4  ;;  %s1648_s22 = int_to_ptr.vmem [resolvable:$true] %s254_s22 }
  0x16   : > { %s1650_s24 = sshll.u32 %s1527_s23, 4  ;;  %s1369_s10 = scalar_lea.hbm %s1936_s6, 2048  ;;  %s284_s24 = int_to_ptr.vmem [resolvable:$true] %s1650_s24 }
  0x17   : > { %p1644_p12 = pnand %p1939_p9, %p1281_p11  ;;  %p1370_p13 = scmp.ne.s32.totalorder %s1936_s6, %s1369_s10 }
  0x18   : > { %p1376_p3 = scmp.lt.u32.totalorder %s1369_s10, %s1936_s6 }
  0x19   : > { %p1660_p0 = pneg %p1644_p12 }
  0x1b   : > { %p1372_p1 = pnand %p1660_p0, %p1370_p13 }
  0x1d   : > { %p1373_p2 = pneg %p1372_p1 }
  0x1f   : > { %p1378_p4 = pnand %p1376_p3, %p1373_p2 }
  0x21   : > { %1381 = shalt.err (!%p1378_p4)
}
  0x22   : > { %s1382_s25 = scalar_lea.vmem %s1640_s19, 2048  ;;  %p1390_p9 = scmp.lt.s32.totalorder %s1640_s19, %s1640_s19 }
  0x23   : > { %p1383_p7 = scmp.ne.s32.totalorder %s1640_s19, %s1382_s25  ;;  %p1391_p6 = scmp.lt.s32.totalorder %s1382_s25, %s1382_s25 }
  0x25   : > { %p1385_p8 = pnand %p1383_p7, %p1660_p0  ;;  %p1392_p13 = por %p1391_p6, %p1390_p9 }
  0x27   : > { %p1386_p11 = pneg %p1385_p8 }
  0x29   : > { %p1393_p1 = pnand %p1392_p13, %p1386_p11 }
  0x2b   : > { %1396 = shalt.err (!%p1393_p1)
}
  0x2c   : > { %s1528_s26 = smov 128   ;;  %s1529_s10 = smov 8  }
  0x2d   : > { %1287 = dma.hbm_to_vmem [thread:$0]  (!%p1644_p12), %s1936_s6, 2048, %s1640_s19, [#allocation6], %s1528_s26, %s1528_s26, %s1529_s10  }
  0x2e   : > { %s1397_s25 = scalar_lea.hbm %s1934_s4, 256 }
  0x2f   : > { %p1398_p6 = scmp.ne.s32.totalorder %s1934_s4, %s1397_s25  ;;  %p1404_p3 = scmp.lt.u32.totalorder %s1397_s25, %s1934_s4 }
  0x31   : > { %p1400_p9 = pnand %p1398_p6, %p1660_p0 }
  0x33   : > { %p1401_p2 = pneg %p1400_p9 }
  0x35   : > { %p1406_p4 = pnand %p1404_p3, %p1401_p2 }
  0x37   : > { %1409 = shalt.err (!%p1406_p4)
}
  0x38   : > { %s1410_s19 = scalar_lea.vmem %s1648_s22, 256  ;;  %p1418_p13 = scmp.lt.s32.totalorder %s1648_s22, %s1648_s22 }
  0x39   : > { %p1411_p7 = scmp.ne.s32.totalorder %s1648_s22, %s1410_s19  ;;  %p1419_p1 = scmp.lt.s32.totalorder %s1410_s19, %s1410_s19 }
  0x3b   : > { %p1413_p8 = pnand %p1411_p7, %p1660_p0  ;;  %p1420_p6 = por %p1419_p1, %p1418_p13 }
  0x3d   : > { %p1414_p11 = pneg %p1413_p8 }
  0x3f   : > { %p1421_p9 = pnand %p1420_p6, %p1414_p11 }
  0x41   : > { %1424 = shalt.err (!%p1421_p9)
}
  0x42   : > { %1284 = dma.hbm_to_vmem [thread:$0]  (!%p1644_p12), %s1934_s4, 256, %s1648_s22, [#allocation3], %s1528_s26, %s1528_s26, %s1529_s10  }
  0x43   : > { %s1425_s12 = scalar_lea.hbm %s1937_s7, 2048 }
  0x44   : > { %p1426_p2 = scmp.ne.s32.totalorder %s1937_s7, %s1425_s12  ;;  %p1432_p7 = scmp.lt.u32.totalorder %s1425_s12, %s1937_s7 }
  0x46   : > { %p1428_p3 = pnand %p1426_p2, %p1660_p0 }
  0x48   : > { %p1429_p4 = pneg %p1428_p3 }
  0x4a   : > { %p1434_p8 = pnand %p1432_p7, %p1429_p4 }
  0x4c   : > { %1437 = shalt.err (!%p1434_p8)
}
  0x4d   : > { %s1438_s19 = scalar_lea.vmem %s284_s24, 2048  ;;  %p1446_p6 = scmp.lt.s32.totalorder %s284_s24, %s284_s24 }
  0x4e   : > { %p1439_p11 = scmp.ne.s32.totalorder %s284_s24, %s1438_s19  ;;  %p1447_p9 = scmp.lt.s32.totalorder %s1438_s19, %s1438_s19 }
  0x50   : > { %p1441_p13 = pnand %p1439_p11, %p1660_p0  ;;  %p1448_p5 = por %p1447_p9, %p1446_p6 }
  0x52   : > { %p1442_p1 = pneg %p1441_p13 }
  0x54   : > { %p1449_p10 = pnand %p1448_p5, %p1442_p1 }
  0x56   : > { %1452 = shalt.err (!%p1449_p10)
}
  0x57   : > { %1290 = dma.hbm_to_vmem [thread:$0]  (!%p1644_p12), %s1937_s7, 2048, %s284_s24, [#allocation6], %s1528_s26, %s1528_s26, %s1529_s10  }
  0x58   : > { %p1955_p2 = scmp.ne.s32.totalorder %s1952_s17, 0 }
  0x59   : > { %p1956_p0 = scmp.eq.s32.totalorder (!%p1955_p2), %s1606_s9, 0 }
  0x5a   : > { %327 = sbr.rel (%p1955_p2) target bundleno = 1126 (0x466), region = 52 }
  0x61   : > { %1498 = dma.done.wait (%p1956_p0), [#allocation3], 256   ;;  %p1957_p3 = pmov %p1956_p0 }
  0x62   : > { %p1958_p5 = pmov %p1956_p0 }
  0x63   : > { %1500 = vsyncadd (%p1957_p3), [#allocation3], 4294967040 }
  0x64   : > { %1502 = dma.done.wait (%p1958_p5), [#allocation6], 4096   ;;  %p1959_p10 = pmov %p1956_p0 }
  0x65   : > { %p380_p4 = scmp.lt.s32.totalorder %s1606_s9, 2  ;;  %v1530_v0 = vmov 0   ;;  %v1531_v1 = vmov 1   ;;  %v1532_v2 = vmov 0.0|0.0   ;;  %v404_v5 = vld [vmem:[#allocation2] sm:$0xff]  ;;  %v405_v6 = vld [vmem:[#allocation2 + $0x8] sm:$0xff]  ;;  %v397_v12 = vlaneseq }
  0x66   : > { %1504 = vsyncadd (%p1959_p10), [#allocation6], 4294963200  ;;  %1348 = vset.pattern.permute.xlu0 %v1530_v0  ;;  %1349 = vset.pattern.permute.xlu1 %v1531_v1  ;;  %v1189_v7 = vpack.c.bf16 %v405_v6, %v404_v5  ;;  %vm1533_vm0 = vmmov 0   ;;  %v1534_v8 = vmov 0.0   ;;  %v1535_v9 = vmov 2   ;;  %v510_v14 = vld [vmem:[%s1935_s5] sm:$0xff] }
  0x67   : > { %s381_s17 = scalar_select %p380_p4, %s1606_s9, 2  ;;  %1188 = vmatprep.subr.bf16.mxu1 %v1532_v2  ;;  %1215 = vmatprep.subr.bf16.mxu0 %v1532_v2  ;;  %v1536_v10 = vmov 3   ;;  %v1537_v11 = vmov 4   ;;  %v1767_v13 = vand.u32 127, %v397_v12  ;;  %v511_v15 = vld [vmem:[%s1935_s5 + $0x8] sm:$0xff]  ;;  %vm406_vm1 = vcmask 130048  }
  0x68   : > { %1080 = vmatprep.mubr.msk.f32.mxu1 %vm1533_vm0, %v1534_v8  ;;  %1150 = vmatprep.mubr.msk.f32.mxu0 %vm1533_vm0, %v1534_v8  ;;  %v1192_v17 = vpack.c.bf16 %v511_v15, %v510_v14  ;;  %v512_v18 = vld [vmem:[%s1935_s5 + $0x10] sm:$0xff]  ;;  %v513_v19 = vld [vmem:[%s1935_s5 + $0x18] sm:$0xff]  ;;  %v514_v22 = vld [vmem:[%s1935_s5 + $0x20] sm:$0xff]  ;;  %s377_s19 = sand.u32 1, %s1515_s28   ;;  %s1019_s24 = sshll.u32 %s1606_s9, 7 }
  0x69   : > { %s1747_s20 = sshll.u32 %s381_s17, 3  ;;  %1190 = vmatpush3.bf16.msra.mxu1 %v1189_v7  ;;  %v1195_v21 = vpack.c.bf16 %v513_v19, %v512_v18  ;;  %v515_v23 = vld [vmem:[%s1935_s5 + $0x28] sm:$0xff]  ;;  %v516_v25 = vld [vmem:[%s1935_s5 + $0x30] sm:$0xff]  ;;  %v517_v26 = vld [vmem:[%s1935_s5 + $0x38] sm:$0xff]  ;;  %s1010_s22 = sshll.u32 %s377_s19, 3 }
  0x6a   : > { %s383_s26 = scalar_lea.vmem %s1930_s0, %s1747_s20  ;;  %s391_s14 = scalar_lea.vmem %s1932_s2, %s1747_s20  ;;  %1191 = vmatprep.subr.bf16.mxu1 %v1532_v2  ;;  %v1198_v24 = vpack.c.bf16 %v515_v23, %v514_v22  ;;  %v1201_v29 = vpack.c.bf16 %v517_v26, %v516_v25  ;;  %v518_v30 = vld [vmem:[%s1935_s5 + $0x40] sm:$0xff]  ;;  %v519_v31 = vld [vmem:[%s1935_s5 + $0x48] sm:$0xff]  ;;  %v520_v34 = vld [vmem:[%s1935_s5 + $0x50] sm:$0xff]  ;;  %v1538_v23 = vmov 5  }
  0x6b   : > { %v396_v3 = vld [vmem:[%s383_s26] sm:$0xff]  ;;  %v1204_v33 = vpack.c.bf16 %v519_v31, %v518_v30  ;;  %v521_v35 = vld [vmem:[%s1935_s5 + $0x58] sm:$0xff]  ;;  %v523_v42 = vld [vmem:[%s1935_s5 + $0x68] sm:$0xff]  ;;  %s395_s13 = scalar_lea.vmem %s1933_s3, %s1747_s20  ;;  %s387_s25 = scalar_lea.vmem %s1931_s1, %s1747_s20 }
  0x6c   : > { %v480_v4 = vld [vmem:[%s391_s14] sm:$0xff]  ;;  %400 = vperm.xlu0 %1348, %v396_v3   ;;  %v1207_v39 = vpack.c.bf16 %v521_v35, %v520_v34  ;;  %v524_v47 = vld [vmem:[%s1935_s5 + $0x70] sm:$0xff]  ;;  %v525_v48 = vld [vmem:[%s1935_s5 + $0x78] sm:$0xff]  ;;  %s1017_s20 = sshll.u32 %s1606_s9, 3  ;;  %s379_s29 = scalar_lea.vmem [#allocation8], %s1010_s22 }
  0x6d   : > { %487 = vperm.xlu1 %1349, %v480_v4   ;;  %v522_v41 = vld [vmem:[%s1935_s5 + $0x60] sm:$0xff]  ;;  %v1213_v50 = vpack.c.bf16 %v525_v48, %v524_v47  ;;  %v613_v55 = vld [vmem:[#allocation7 + $0x8] sm:$0xff]  ;;  %v614_v57 = vld [vmem:[#allocation7 + $0x10] sm:$0xff]  ;;  %s874_s17 = sshll.u32 %s379_s29, 4  ;;  %s1890_s11 = scalar_lea.hbm %s1938_s8, %s1019_s24  ;;  %s1885_s17 = int_to_ptr.vmem [resolvable:$true] %s874_s17 }
  0x6e   : > { %v1210_v45 = vpack.c.bf16 %v523_v42, %v522_v41  ;;  %v612_v54 = vld [vmem:[#allocation7] sm:$0xff]  ;;  %v615_v58 = vld [vmem:[#allocation7 + $0x18] sm:$0xff]  ;;  %v617_v61 = vld [vmem:[#allocation7 + $0x28] sm:$0xff]  ;;  %s861_s14 = scalar_lea.sflag [#allocation4], %s377_s19  ;;  %s1453_s16 = scalar_lea.vmem %s1885_s17, 128 }
  0x6f   : > { %v1216_v56 = vpack.c.bf16 %v613_v55, %v612_v54  ;;  %v1219_v59 = vpack.c.bf16 %v615_v58, %v614_v57  ;;  %v616_v60 = vld [vmem:[#allocation7 + $0x20] sm:$0xff]  ;;  %v618_v63 = vld [vmem:[#allocation7 + $0x30] sm:$0xff]  ;;  %v621_v5 = vld [vmem:[#allocation7 + $0x48] sm:$0xff]  ;;  %p1454_p12 = scmp.ne.s32.totalorder %s1885_s17, %s1453_s16  ;;  %p1960_p7 = scmp.ne.s32.totalorder %s1949_s15, 0 }
  0x70   : > { %482 = vperm.xlu0 %1348, %v480_v4   ;;  %v1222_v62 = vpack.c.bf16 %v617_v61, %v616_v60  ;;  %v622_v7 = vld [vmem:[#allocation7 + $0x50] sm:$0xff]  ;;  %v623_v14 = vld [vmem:[#allocation7 + $0x58] sm:$0xff]  ;;  %v799_v22 = vld [vmem:[%s395_s13] sm:$0xff]  ;;  %s1539_s9 = smov [#allocation8]  }
  0x71   : > { %1350 = vset.pattern.permute.xlu1 %v1535_v9  ;;  %1217 = vmatpush3.bf16.msra.mxu0 %v1216_v56  ;;  %v1231_v15 = vpack.c.bf16 %v623_v14, %v622_v7  ;;  %v626_v19 = vld [vmem:[#allocation7 + $0x70] sm:$0xff]  ;;  %v597_v26 = vld [vmem:[#allocation5 + $0x8] sm:$0xff]  ;;  %v603_v35 = vld [vmem:[#allocation5 + $0x38] sm:$0xff]  ;;  %p1455_p8 = pnand %p1454_p12, %p1960_p7  ;;  %s1457_s12 = sshll.u32 %s1539_s9, 4  ;;  %s1458_s12 = int_to_ptr.vmem [resolvable:$false] %s1457_s12 }
  0x72   : > { %493 = vperm.xlu1 %1350, %v480_v4   ;;  %1218 = vmatprep.subr.bf16.mxu0 %v1532_v2  ;;  %v602_v34 = vld [vmem:[#allocation5 + $0x30] sm:$0xff]  ;;  %v607_v41 = vld [vmem:[#allocation5 + $0x58] sm:$0xff]  ;;  %s1459_s13 = scalar_lea.vmem %s1458_s12, 256  ;;  %p1460_p13 = scmp.lt.s32.totalorder %s1885_s17, %s1458_s12 }
  0x73   : > { %v611_v47 = vld [vmem:[#allocation5 + $0x78] sm:$0xff]  ;;  %p1456_p11 = pneg %p1455_p8  ;;  %p1461_p1 = scmp.lt.s32.totalorder %s1459_s13, %s1453_s16 }
  0x74   : > { %1351 = vset.pattern.permute.xlu0 %v1536_v10 }
  0x75   : > { %499 = vperm.xlu0 %1351, %v480_v4   ;;  %1220 = vmatpush3.bf16.msra.mxu0 %v1219_v59  ;;  %p1462_p6 = por %p1461_p1, %p1460_p13 }
  0x76   : > { %1352 = vset.pattern.permute.xlu1 %v1537_v11  ;;  %1221 = vmatprep.subr.bf16.mxu0 %v1532_v2 }
  0x77   : > { %505 = vperm.xlu1 %1352, %v480_v4   ;;  %v620_v4 = vld [vmem:[#allocation7 + $0x40] sm:$0xff]  ;;  %p1463_p9 = pnand %p1462_p6, %p1456_p11 }
  0x78   : > { %v1228_v6 = vpack.c.bf16 %v621_v5, %v620_v4 }
  0x79   : > { %1354 = vset.pattern.permute.xlu0 %v1531_v1  ;;  %v619_v1 = vld [vmem:[#allocation7 + $0x38] sm:$0xff]  ;;  %1223 = vmatpush3.bf16.msra.mxu0 %v1222_v62 }
  0x7a   : > { %v1225_v3 = vpack.c.bf16 %v619_v1, %v618_v63  ;;  %1224 = vmatprep.subr.bf16.mxu0 %v1532_v2  ;;  %806 = vperm.xlu0 %1354, %v799_v22  }
  0x7b   : > { %1353 = vset.pattern.permute.xlu1 %v1530_v0 }
  0x7c   : > { %801 = vperm.xlu1 %1353, %v799_v22  }
  0x7d   : > { %1226 = vmatpush3.bf16.msra.mxu0 %v1225_v3 }
  0x7e   : > { %1227 = vmatprep.subr.bf16.mxu0 %v1532_v2  ;;  %1357 = vset.pattern.permute.xlu0 %v1537_v11  ;;  %v596_v11 = vld [vmem:[#allocation5] sm:$0xff] }
  0x7f   : > { %824 = vperm.xlu0 %1357, %v799_v22  }
  0x80   : > { %1355 = vset.pattern.permute.xlu1 %v1535_v9 }
  0x81   : > { %1229 = vmatpush3.bf16.msra.mxu0 %v1228_v6  ;;  %812 = vperm.xlu1 %1355, %v799_v22  }
  0x82   : > { %1230 = vmatprep.subr.bf16.mxu0 %v1532_v2 }
  0x83   : > { %1360 = vset.pattern.permute.xlu0 %v1538_v23 }
  0x85   : > { %1232 = vmatpush3.bf16.msra.mxu0 %v1231_v15  ;;  %1356 = vset.pattern.permute.xlu1 %v1536_v10  ;;  %v599_v10 = vld [vmem:[#allocation5 + $0x18] sm:$0xff] }
  0x86   : > { %1233 = vmatprep.subr.bf16.mxu0 %v1532_v2  ;;  %818 = vperm.xlu1 %1356, %v799_v22  }
  0x8a   : > { %1358 = vset.pattern.permute.xlu1 %v1538_v23 }
  0x8b   : > { %830 = vperm.xlu1 %1358, %v799_v22  }
  0x8f   : > { %1359 = vset.pattern.permute.xlu1 %v1530_v0  ;;  %v601_v0 = vld [vmem:[#allocation5 + $0x28] sm:$0xff] }
  0xeb   : > { %v401_v16 = vpop.permute.xlu0 %400 }
  0xec   : > { %vm402_vm2 = vcmp.eq.s32.totalorder %v401_v16, %v1767_v13  ;;  %v488_v27 = vpop.permute.xlu1 %487  ;;  %v624_v16 = vld [vmem:[#allocation7 + $0x60] sm:$0xff] }
  0xed   : > { %v403_v20 = vsel %vm402_vm2, 1.0, %v1534_v8  ;;  %vm489_vm3 = vcmp.eq.s32.totalorder %v488_v27, %v1767_v13  ;;  %v1240_v27 = vpack.c.bf16 %v597_v26, %v596_v11  ;;  %vm847_vm2 = vcmask 7168  }
  0xee   : > { %1081 = vmatmul.mubr.msk.f32.vlgmr.msra.gmra.mrb[0].mxu1 %vm406_vm1, %v403_v20  ;;  %v490_v36 = vsel %vm489_vm3, 1.0, %v1534_v8  ;;  %v627_v20 = vld [vmem:[#allocation7 + $0x78] sm:$0xff] }
  0xef   : > { %1193 = vmatpush3.bf16.msra.mxu1 %v1192_v17  ;;  %1115 = vmatprep.mubr.msk.f32.mxu1 %vm1533_vm0, %v1534_v8  ;;  %v483_v28 = vpop.permute.xlu0 %482  ;;  %v625_v17 = vld [vmem:[#allocation7 + $0x68] sm:$0xff] }
  0xf0   : > { %1194 = vmatprep.subr.bf16.mxu1 %v1532_v2  ;;  %vm484_vm4 = vcmp.eq.s32.totalorder %v483_v28, %v1767_v13  ;;  %v1234_v18 = vpack.c.bf16 %v625_v17, %v624_v16  ;;  %v598_v28 = vld [vmem:[#allocation5 + $0x10] sm:$0xff] }
  0xf1   : > { %v494_v32 = vpop.permute.xlu1 %493  ;;  %v485_v37 = vsel %vm484_vm4, 1.0, %v1534_v8  ;;  %v1243_v31 = vpack.c.bf16 %v599_v10, %v598_v28 }
  0xf2   : > { %vm495_vm5 = vcmp.eq.s32.totalorder %v494_v32, %v1767_v13  ;;  %v491_v40 = vadd.f32 %v490_v36, %v485_v37  ;;  %1235 = vmatpush3.bf16.msra.mxu0 %v1234_v18  ;;  %v600_v32 = vld [vmem:[#allocation5 + $0x20] sm:$0xff]  ;;  %v1249_v36 = vpack.c.bf16 %v603_v35, %v602_v34  ;;  %v843_v34 = vstv %s1017_s20 }
  0xf3   : > { %1196 = vmatpush3.bf16.msra.mxu1 %v1195_v21  ;;  %v496_v43 = vsel %vm495_vm5, 1.0, %v1534_v8  ;;  %v1237_v21 = vpack.c.bf16 %v627_v20, %v626_v19  ;;  %1236 = vmatprep.subr.bf16.mxu0 %v1532_v2  ;;  %v604_v37 = vld [vmem:[#allocation5 + $0x40] sm:$0xff] }
  0xf4   : > { %1197 = vmatprep.subr.bf16.mxu1 %v1532_v2  ;;  %v500_v38 = vpop.permute.xlu0 %499  ;;  %v497_v46 = vadd.f32 %v496_v43, %v491_v40  ;;  %v606_v40 = vld [vmem:[#allocation5 + $0x50] sm:$0xff]  ;;  %v608_v43 = vld [vmem:[#allocation5 + $0x60] sm:$0xff] }
  0xf5   : > { %vm501_vm6 = vcmp.eq.s32.totalorder %v500_v38, %v1767_v13  ;;  %v605_v38 = vld [vmem:[#allocation5 + $0x48] sm:$0xff]  ;;  %v1255_v42 = vpack.c.bf16 %v607_v41, %v606_v40 }
  0xf6   : > { %v506_v44 = vpop.permute.xlu1 %505  ;;  %v502_v49 = vsel %vm501_vm6, 1.0, %v1534_v8  ;;  %1238 = vmatpush3.bf16.msra.mxu0 %v1237_v21 }
  0xf7   : > { %1199 = vmatpush3.bf16.msra.mxu1 %v1198_v24  ;;  %vm507_vm7 = vcmp.eq.s32.totalorder %v506_v44, %v1767_v13  ;;  %v503_v51 = vadd.f32 %v502_v49, %v497_v46  ;;  %1239 = vmatprep.subr.bf16.mxu0 %v1532_v2  ;;  %v793_v24 = vld [vmem:[%s387_s25] sm:$0xff]  ;;  %v609_v44 = vld [vmem:[#allocation5 + $0x68] sm:$0xff]  ;;  %v610_v46 = vld [vmem:[#allocation5 + $0x70] sm:$0xff] }
  0xf8   : > { %1200 = vmatprep.subr.bf16.mxu1 %v1532_v2  ;;  %v508_v52 = vsel %vm507_vm7, 1.0, %v1534_v8  ;;  %795 = vperm.xlu1 %1359, %v793_v24   ;;  %v1261_v48 = vpack.c.bf16 %v611_v47, %v610_v46 }
  0xf9   : > { %v509_v53 = vadd.f32 %v508_v52, %v503_v51  ;;  %v807_v56 = vpop.permute.xlu0 %806 }
  0xfa   : > { %vm808_vm9 = vcmp.eq.s32.totalorder %v807_v56, %v1767_v13 }
  0xfb   : > { %1202 = vmatpush3.bf16.msra.mxu1 %v1201_v29  ;;  %v802_v54 = vpop.permute.xlu1 %801 }
  0xfc   : > { %1203 = vmatprep.subr.bf16.mxu1 %v1532_v2  ;;  %vm803_vm8 = vcmp.eq.s32.totalorder %v802_v54, %v1767_v13 }
  0xfd   : > { %v804_v58 = vsel %vm803_vm8, 1.0, %v1534_v8 }
  0xfe   : > { %v825_v4 = vpop.permute.xlu0 %824 }
  0xff   : > { %1205 = vmatpush3.bf16.msra.mxu1 %v1204_v33  ;;  %v1246_v33 = vpack.c.bf16 %v601_v0, %v600_v32  ;;  %vm826_vm12 = vcmp.eq.s32.totalorder %v825_v4, %v1767_v13 }
 0x100   : > { %1206 = vmatprep.subr.bf16.mxu1 %v1532_v2  ;;  %v813_v57 = vpop.permute.xlu1 %812  ;;  %v827_v17 = vsel %vm826_vm12, 1.0, %v1534_v8 }
 0x101   : > { %vm814_vm10 = vcmp.eq.s32.totalorder %v813_v57, %v1767_v13 }
 0x102   : > { %v815_v1 = vsel %vm814_vm10, 1.0, %v1534_v8 }
 0x103   : > { %1208 = vmatpush3.bf16.msra.mxu1 %v1207_v39  ;;  %v1252_v39 = vpack.c.bf16 %v605_v38, %v604_v37 }
 0x104   : > { %1209 = vmatprep.subr.bf16.mxu1 %v1532_v2 }
 0x105   : > { %v819_v60 = vpop.permute.xlu1 %818 }
 0x106   : > { %vm820_vm11 = vcmp.eq.s32.totalorder %v819_v60, %v1767_v13 }
 0x107   : > { %1211 = vmatpush3.bf16.msra.mxu1 %v1210_v45  ;;  %v1258_v45 = vpack.c.bf16 %v609_v44, %v608_v43  ;;  %v821_v6 = vsel %vm820_vm11, 1.0, %v1534_v8 }
 0x108   : > { %1212 = vmatprep.subr.bf16.mxu1 %v1532_v2 }
 0x10a   : > { %v831_v7 = vpop.permute.xlu1 %830 }
 0x10b   : > { %1214 = vmatpush3.bf16.msra.mxu1 %v1213_v50  ;;  %vm832_vm13 = vcmp.eq.s32.totalorder %v831_v7, %v1767_v13 }
 0x10e   : > { %1116 = vmatmul.mubr.f32.vlgmr.msra.gmra.mrb[2].mxu1 %v509_v53 }
 0x177   : > { %v796_v18 = vpop.permute.xlu1 %795 }
 0x178   : > { %vm797_vm14 = vcmp.eq.s32.totalorder %v796_v18, %v1767_v13  ;;  %v841_v13 = vshrl.u32 %v397_v12, 7 }
 0x179   : > { %v798_v10 = vsel %vm797_vm14, 1.0, %v1534_v8 }
 0x17a   : > { %v844_v35 = vadd.s32 %v843_v34, %v841_v13 }
 0x17c   : > { %vm845_vm1 = vcmp.lt.s32.totalorder %v844_v35, 20 }
 0x1c1   : > { %v476_v9 = vpop.f32.mrb[0].mxu1 }
 0x1c2   : > { %v1082_v25 = vpop.f32.mrb[1].mxu1 }
 0x1e1   : > { %v592_v29 = vpop.f32.mrb[2].mxu1 }
 0x1e2   : > { %v1117_v30 = vpop.f32.mrb[3].mxu1  ;;  %1151 = vmatmul.mubr.f32.vlgmr.msra.gmra.mrb[0].mxu0 %v592_v29 }
 0x1e3   : > { %1241 = vmatpush3.bf16.msra.mxu0 %v1240_v27  ;;  %1185 = vmatprep.mubr.msk.f32.mxu0 %vm1533_vm0, %v1534_v8 }
 0x1e4   : > { %1242 = vmatprep.subr.bf16.mxu0 %v1532_v2 }
 0x1e7   : > { %1244 = vmatpush3.bf16.msra.mxu0 %v1243_v31 }
 0x1e8   : > { %1245 = vmatprep.subr.bf16.mxu0 %v1532_v2 }
 0x1eb   : > { %1247 = vmatpush3.bf16.msra.mxu0 %v1246_v33 }
 0x1ec   : > { %1248 = vmatprep.subr.bf16.mxu0 %v1532_v2 }
 0x1ef   : > { %1250 = vmatpush3.bf16.msra.mxu0 %v1249_v36 }
 0x1f0   : > { %1251 = vmatprep.subr.bf16.mxu0 %v1532_v2 }
 0x1f3   : > { %1253 = vmatpush3.bf16.msra.mxu0 %v1252_v39 }
 0x1f4   : > { %1254 = vmatprep.subr.bf16.mxu0 %v1532_v2 }
 0x1f7   : > { %1256 = vmatpush3.bf16.msra.mxu0 %v1255_v42 }
 0x1f8   : > { %1257 = vmatprep.subr.bf16.mxu0 %v1532_v2 }
 0x1fb   : > { %1259 = vmatpush3.bf16.msra.mxu0 %v1258_v45 }
 0x1fc   : > { %1260 = vmatprep.subr.bf16.mxu0 %v1532_v2  ;;  %v809_v2 = vsel %vm808_vm9, 1.0, %v1534_v8 }
 0x1fd   : > { %v810_v61 = vadd.f32 %v809_v2, %v804_v58 }
 0x1ff   : > { %1262 = vmatpush3.bf16.msra.mxu0 %v1261_v48  ;;  %v816_v5 = vadd.f32 %v815_v1, %v810_v61 }
 0x201   : > { %v822_v16 = vadd.f32 %v821_v6, %v816_v5 }
 0x202   : > { %1186 = vmatmul.mubr.f32.vlgmr.msra.gmra.mrb[0].mxu0 %v476_v9  ;;  %v833_v9 = vsel %vm832_vm13, 1.0, %v1534_v8 }
 0x203   : > { %v828_v23 = vadd.f32 %v827_v17, %v822_v16 }
 0x205   : > { %v834_v30 = vadd.f32 %v833_v9, %v828_v23 }
 0x2d5   : > { %v764_v49 = vpop.f32.mrb[0].mxu0 }
 0x2d6   : > { %v1016_v50 = vclamps-f32 %v764_v49, 10.0  ;;  %v1187_v51 = vpop.f32.mrb[1].mxu0 }
 0x2d8   : > { %v770_v52 = vsub.f32 0.0, %v1016_v50  ;;  %v782_v53 = vmul.f32 1.442695, %v1016_v50 }
 0x2da   : > { %v771_v55 = vmul.f32 1.442695, %v770_v52  ;;  %1361 = vpow2.f32 %v782_v53 }
 0x2dc   : > { %1363 = vpow2.f32 %v771_v55 }
 0x2e4   : > { %v1362_v59 = vpop.eup %1361 }
 0x2e5   : > { %v784_v62 = vadd.f32 1.0, %v1362_v59  ;;  %v787_v14 = vmul.f32 -0.5, %v1362_v59  ;;  %v790_v20 = vand.u32 2147483647, %v1362_v59 }
 0x2e6   : > { %v1364_v63 = vpop.eup %1363 }
 0x2e7   : > { %v773_v3 = vadd.f32 1.0, %v1364_v63  ;;  %1365 = vlog2.f32 %v784_v62  ;;  %v776_v15 = vmul.f32 -0.5, %v1364_v63  ;;  %v788_v19 = vadd.f32 1.0, %v787_v14 }
 0x2e8   : > { %v779_v24 = vand.u32 2147483647, %v1364_v63  ;;  %vm791_vm15 = vcmp.lt.f32.partialorder %v790_v20, 0.0004427343 }
 0x2e9   : > { %1367 = vlog2.f32 %v773_v3  ;;  %v777_v21 = vadd.f32 1.0, %v776_v15  ;;  %v789_v11 = vmul.f32 %v1362_v59, %v788_v19 }
 0x2ea   : > { %vm780_vm0 = vcmp.lt.f32.partialorder %v779_v24, 0.0004427343 }
 0x2eb   : > { %v778_v28 = vmul.f32 %v1364_v63, %v777_v21 }
 0x2f1   : > { %v1366_v22 = vpop.eup %1365 }
 0x2f2   : > { %v786_v25 = vmul.f32 0.6931472, %v1366_v22 }
 0x2f3   : > { %v1368_v26 = vpop.eup %1367 }
 0x2f4   : > { %v775_v27 = vmul.f32 0.6931472, %v1368_v26  ;;  %v792_v29 = vsel %vm791_vm15, %v789_v11, %v786_v25 }
 0x2f5   : > { %v836_v0 = vmul.f32 %v834_v30, %v792_v29 }
 0x2f6   : > { %v781_v31 = vsel %vm780_vm0, %v778_v28, %v775_v27 }
 0x2f7   : > { %v835_v32 = vmul.f32 %v798_v10, %v781_v31 }
 0x2f9   : > { %v837_v33 = vadd.f32 %v836_v0, %v835_v32 }
 0x2fb   : > { %838 = vadd.xlane.f32.xlu0 %v837_v33 }
 0x388   : > { %v839_v36 = vpop.xlane.xlu0 %838 }
 0x389   : > { %v846_v37 = vsel %vm845_vm1, %v839_v36, 0.0 }
 0x38a   : > { %v848_v8 = vsel %vm847_vm2, %v846_v37, 0.0 }
 0x38b   : > { %849 = vadd.xlane.f32.xlu1 %v848_v8 }
 0x418   : > { %v850_v38 = vpop.xlane.xlu1 %849 }
 0x419   : > { %v851_v39 = vrot.slane %v850_v38, 4 }
 0x41b   : > { %v852_v40 = vadd.f32 %v851_v39, %v850_v38 }
 0x41d   : > { %v853_v41 = vrot.slane %v852_v40, 2 }
 0x41f   : > { %v854_v42 = vadd.f32 %v853_v41, %v852_v40 }
 0x421   : > { %v855_v43 = vrot.slane %v854_v42, 1 }
 0x423   : > { %v856_v44 = vadd.f32 %v855_v43, %v854_v42 }
 0x425   : > { %1265 = vpush %v856_v44 }
 0x456   : > { %s1266_s18 = spop %1265 }
 0x457   : > { %v858_v12 = vstv %s1266_s18 }
 0x458   : > { %859 = vst [vmem:[%s379_s29] sm:$0xff] %v858_v12 }
 0x459   : > { %1466 = shalt.err (!%p1463_p9)
}
 0x45a   : > { %s1467_s21 = scalar_lea.hbm %s1890_s11, 128  ;;  %s1471_s20 = scalar_lea.hbm %s1938_s8, 384 }
 0x45b   : > { %p1468_p2 = scmp.ne.s32.totalorder %s1890_s11, %s1467_s21  ;;  %p1472_p5 = scmp.lt.u32.totalorder %s1890_s11, %s1938_s8 }
 0x45c   : > { %p1473_p10 = scmp.lt.u32.totalorder %s1471_s20, %s1467_s21  ;;  %p1475_p12 = scmp.lt.u32.totalorder %s1467_s21, %s1890_s11 }
 0x45d   : > { %p1469_p0 = pnand %p1468_p2, %p1960_p7 }
 0x45e   : > { %p1474_p4 = por %p1473_p10, %p1472_p5 }
 0x45f   : > { %p1470_p3 = pneg %p1469_p0 }
 0x460   : > { %p1476_p8 = por %p1475_p12, %p1474_p4 }
 0x462   : > { %p1477_p11 = pnand %p1476_p8, %p1470_p3 }
 0x464   : > { %1480 = shalt.err (!%p1477_p11)
}
 0x465   : > { %1279 = dma.vmem_to_hbm [thread:$0]  (%p1960_p7), %s1885_s17, 128, %s1890_s11, %s861_s14  }
 0x466 PF: > { %s1961_s29 = sld [smem:[#allocation15_spill]]  ;;  %p1301_p13 = scmp.ge.s32.totalorder %s1523_s30, 2 }
 0x467   : > { %s886_s24 = sand.u32 1, %s1511_s27  }
 0x468   : > { %s887_s18 = scalar_lea.sflag [#allocation4], %s886_s24 }
 0x46c   : > { %p1962_p1 = scmp.ne.s32.totalorder %s1961_s29, 0 }
 0x46e   : > { %p1292_p6 = pnand %p1301_p13, %p1962_p1 }
 0x470   : > { %1506 = dma.done.wait (!%p1292_p6), %s887_s18, 128  }
 0x471   : > { %1508 = vsyncadd (!%p1292_p6), %s887_s18, 4294967168  ;;  %s1963_s30 = sld [smem:[#allocation13_spill]]  ;;  %s1964_s26 = sld [smem:[#allocation12_spill]] }
 0x472   : > { %s1965_s29 = sld [smem:[#allocation14_spill]]  ;;  %s1966_s27 = smov %s1515_s28 }
 0x477   : > { %p20_p9 = scmp.ge.s32.totalorder %s1963_s30, 5   ;;  %s1967_s28 = smov %s1964_s26 }
 0x479   :  { %22 = sbr.rel (!%p20_p9) target bundleno = 5 (0x5), region = 109 }
 0x480   :  { %892 = vsyncpa [#allocation3], 1 }
 0x481   :  { %894 = vsyncpa [#allocation3 + $0x1], 1 }
 0x482   :  { %895 = vsyncpa [#allocation6], 1 }
 0x483   :  { %896 = vsyncpa [#allocation4], 1 }
 0x484   :  { %898 = vsyncpa [#allocation4 + $0x1], 1 }

</bundles_post_ra>
